<compile_context>
chip_gen: v7x
topology: tpu7x:2x2x1
jax: 0.10.0
libtpu: 0.0.40
codegen_flags: <defaults>
</compile_context>

<pallas_src>
import jax
import jax.numpy as jnp
from jax.experimental import pallas as pl
from jax.experimental.pallas import tpu as pltpu


def _round_up(x, m):
    return (x + m - 1) // m * m


def _lora_kernel(x_ref, wt_ref, bias_ref, bt_ref, at_ref, o_ref, acc_ref, t_ref):
    """One (i, j, k) grid step.

    x_ref:    (tm, tk)         input row tile, K-slice k
    wt_ref:   (tk, tn)         W^T tile at (k, j)
    bias_ref: (1, tn)          bias tile at (j)
    bt_ref:   (tk, r_pad)      lora_B^T tile at (k)
    at_ref:   (r_pad, tn)      (scaling * lora_A)^T tile at (j)
    o_ref:    (tm, tn)         output tile at (i, j)
    acc_ref:  (tm, tn)  f32    base-matmul accumulator (VMEM scratch)
    t_ref:    (tm, r_pad) f32  LoRA intermediate accumulator (VMEM scratch)
    """
    k = pl.program_id(2)

    @pl.when(k == 0)
    def _():
        acc_ref[...] = jnp.zeros_like(acc_ref)
        t_ref[...] = jnp.zeros_like(t_ref)

    x = x_ref[...]
    # Base linear path: accumulate x @ W^T over K tiles.
    acc_ref[...] += jnp.dot(x, wt_ref[...], preferred_element_type=jnp.float32)
    # LoRA first matmul: accumulate x @ B^T over K tiles (rank is tiny -> cheap).
    t_ref[...] += jnp.dot(x, bt_ref[...], preferred_element_type=jnp.float32)

    @pl.when(k == pl.num_programs(2) - 1)
    def _():
        # Cast the LoRA intermediate back to the input dtype so the second matmul
        # stays on the fast MXU path (bf16 stays bf16). Scaling is already folded
        # into At in the wrapper, so no extra per-tile VPU multiply here.
        lora = jnp.dot(t_ref[...].astype(x_ref.dtype), at_ref[...],
                       preferred_element_type=jnp.float32)
        o_ref[...] = (acc_ref[...] + bias_ref[...] + lora).astype(o_ref.dtype)


def lora_injection_forward(x, weight, bias, lora_A, lora_B, *, alpha, rank,
                           tm=256, tn=256, tk=512,
                           vmem_limit_bytes=64 * 1024 * 1024):
    """x: (..., in_features). weight: (out, in). bias: (out,).
    lora_A: (out, rank). lora_B: (rank, in). Returns (..., out_features).

    dropout=0 in the reference module -> Identity (implemented).
    # TODO(synk): training-mode dropout (p > 0) on the LoRA path is not implemented.
    """
    in_features = weight.shape[1]
    out_features = weight.shape[0]
    scaling = float(alpha) / float(rank)

    lead_shape = x.shape[:-1]
    x2d = x.reshape(-1, in_features)
    M = x2d.shape[0]

    # Effective tile sizes: lane/sublane aligned, capped by the (padded) problem size.
    tm_eff = min(tm, _round_up(M, 8))
    tn_eff = min(tn, _round_up(out_features, 128))
    tk_eff = min(tk, _round_up(in_features, 128))

    M_pad = _round_up(M, tm_eff)
    N_pad = _round_up(out_features, tn_eff)
    K_pad = _round_up(in_features, tk_eff)
    R_pad = _round_up(rank, 128)          # lane-dense rank axis for the LoRA dots

    # Zero-pad + pre-transpose (layout plumbing; zeros contribute exactly 0).
    x_p = jnp.zeros((M_pad, K_pad), x.dtype).at[:M, :in_features].set(x2d)
    wt = jnp.zeros((K_pad, N_pad), weight.dtype).at[:in_features, :out_features].set(
        jnp.transpose(weight))
    bias2d = jnp.zeros((1, N_pad), bias.dtype).at[0, :out_features].set(bias)
    bt = jnp.zeros((K_pad, R_pad), lora_B.dtype).at[:in_features, :rank].set(
        jnp.transpose(lora_B))
    # Fold alpha/rank into A^T once (tiny (rank, out) tensor).
    at_scaled = jnp.transpose(lora_A * scaling).astype(lora_A.dtype)
    at = jnp.zeros((R_pad, N_pad), lora_A.dtype).at[:rank, :out_features].set(at_scaled)

    grid = (M_pad // tm_eff, N_pad // tn_eff, K_pad // tk_eff)

    out_p = pl.pallas_call(
        _lora_kernel,
        out_shape=jax.ShapeDtypeStruct((M_pad, N_pad), x.dtype),
        grid_spec=pltpu.PrefetchScalarGridSpec(
            num_scalar_prefetch=0,
            grid=grid,
            in_specs=[
                pl.BlockSpec((tm_eff, tk_eff), lambda i, j, k: (i, k)),   # x tile
                pl.BlockSpec((tk_eff, tn_eff), lambda i, j, k: (k, j)),   # W^T tile
                pl.BlockSpec((1, tn_eff), lambda i, j, k: (0, j)),        # bias tile
                pl.BlockSpec((tk_eff, R_pad), lambda i, j, k: (k, 0)),    # B^T tile
                pl.BlockSpec((R_pad, tn_eff), lambda i, j, k: (0, j)),    # (s*A)^T tile
            ],
            out_specs=pl.BlockSpec((tm_eff, tn_eff), lambda i, j, k: (i, j)),
            scratch_shapes=[
                pltpu.VMEM((tm_eff, tn_eff), jnp.float32),   # base accumulator
                pltpu.VMEM((tm_eff, R_pad), jnp.float32),    # LoRA intermediate
            ],
        ),
        compiler_params=pltpu.CompilerParams(
            dimension_semantics=("parallel", "parallel", "arbitrary"),
            vmem_limit_bytes=vmem_limit_bytes,
        ),
    )(x_p, wt, bias2d, bt, at)

    out2d = out_p[:M, :out_features]
    return out2d.reshape(*lead_shape, out_features)


if __name__ == "__main__":
    # Small shapes consistent with the module: batch=2, seq=8, hidden(in)=32, out=32, rank=8
    batch, seq = 2, 8
    in_features, out_features, rank = 32, 32, 8
    alpha = 1.0

    key = jax.random.PRNGKey(0)
    kx, kw, kb, ka, kbm = jax.random.split(key, 5)

    x = jax.random.normal(kx, (batch, seq, in_features), dtype=jnp.float32)
    # Deterministic parameter init (module: Linear default init + normal(std=0.02) LoRA)
    weight = jax.random.normal(kw, (out_features, in_features), dtype=jnp.float32) * 0.05
    bias = jax.random.normal(kb, (out_features,), dtype=jnp.float32) * 0.05
    lora_A = jax.random.normal(ka, (out_features, rank), dtype=jnp.float32) * 0.02
    lora_B = jax.random.normal(kbm, (rank, in_features), dtype=jnp.float32) * 0.02

    out = lora_injection_forward(
        x, weight, bias, lora_A, lora_B, alpha=alpha, rank=rank)
    out = jax.block_until_ready(out)

    # Pure-JAX reference check of the PyTorch semantics.
    scaling = alpha / rank
    ref = x @ weight.T + bias + scaling * ((x @ lora_B.T) @ lora_A.T)
    assert out.shape == (batch, seq, out_features)
    assert jnp.allclose(out, ref, atol=1e-5, rtol=1e-5), "mismatch vs reference"

    print("KERNEL_OK")
</pallas_src>

<mosaic_0001>
module attributes {stable_mosaic.version = 11 : i64} {
  func.func @_lora_kernel(%arg0: i32, %arg1: i32, %arg2: i32, %arg3: memref<16x128xf32, #tpu.memory_space<vmem>>, %arg4: memref<128x128xf32, #tpu.memory_space<vmem>>, %arg5: memref<1x128xf32, #tpu.memory_space<vmem>>, %arg6: memref<128x128xf32, #tpu.memory_space<vmem>>, %arg7: memref<128x128xf32, #tpu.memory_space<vmem>>, %arg8: memref<16x128xf32, #tpu.memory_space<vmem>>, %arg9: memref<16x128xf32, #tpu.memory_space<vmem>>, %arg10: memref<16x128xf32, #tpu.memory_space<vmem>>) attributes {dimension_semantics = [#tpu.dimension_semantics<parallel>, #tpu.dimension_semantics<parallel>, #tpu.dimension_semantics<arbitrary>], iteration_bounds = array<i64: 1, 1, 1>, scalar_prefetch = 0 : i64, scratch_operands = 2 : i64, tpu.core_type = #tpu.core_type<tc>, window_params = [{transform_indices = @transform_0, window_bounds = array<i64: 16, 128>}, {transform_indices = @transform_1, window_bounds = array<i64: 128, 128>}, {transform_indices = @transform_2, window_bounds = array<i64: 1, 128>}, {transform_indices = @transform_3, window_bounds = array<i64: 128, 128>}, {transform_indices = @transform_4, window_bounds = array<i64: 128, 128>}, {transform_indices = @transform_5, window_bounds = array<i64: 16, 128>}]} {
    %c0_i32 = arith.constant 0 : i32
    %0 = arith.cmpi eq, %arg2, %c0_i32 : i32
    %1 = arith.extui %0 : i1 to i32
    %c0_i32_0 = arith.constant 0 : i32
    %2 = arith.cmpi ne, %1, %c0_i32_0 : i32
    scf.if %2 {
      %cst_17 = arith.constant 0.000000e+00 : f32
      %17 = vector.broadcast %cst_17 : f32 to vector<16x128xf32>
      %c0_18 = arith.constant 0 : index
      %c0_19 = arith.constant 0 : index
      %18 = vector.load %arg9[%c0_18, %c0_19] : memref<16x128xf32, #tpu.memory_space<vmem>>, vector<16x128xf32>
      tpu.vector_store %arg9[%c0_18, %c0_19], %17 {strides = array<i32>} : memref<16x128xf32, #tpu.memory_space<vmem>>, vector<16x128xf32>,
      %cst_20 = arith.constant 0.000000e+00 : f32
      %19 = vector.broadcast %cst_20 : f32 to vector<16x128xf32>
      %c0_21 = arith.constant 0 : index
      %c0_22 = arith.constant 0 : index
      %20 = vector.load %arg10[%c0_21, %c0_22] : memref<16x128xf32, #tpu.memory_space<vmem>>, vector<16x128xf32>
      tpu.vector_store %arg10[%c0_21, %c0_22], %19 {strides = array<i32>} : memref<16x128xf32, #tpu.memory_space<vmem>>, vector<16x128xf32>,
    } else {
    }
    %c0 = arith.constant 0 : index
    %c0_1 = arith.constant 0 : index
    %3 = vector.load %arg3[%c0, %c0_1] : memref<16x128xf32, #tpu.memory_space<vmem>>, vector<16x128xf32>
    %c0_2 = arith.constant 0 : index
    %c0_3 = arith.constant 0 : index
    %4 = vector.load %arg9[%c0_2, %c0_3] : memref<16x128xf32, #tpu.memory_space<vmem>>, vector<16x128xf32>
    %c0_4 = arith.constant 0 : index
    %c0_5 = arith.constant 0 : index
    %5 = vector.load %arg4[%c0_4, %c0_5] : memref<128x128xf32, #tpu.memory_space<vmem>>, vector<128x128xf32>
    %cst = arith.constant dense<0.000000e+00> : vector<16x128xf32>
    %6 = tpu.matmul %3, %5, %cst {dimension_numbers = #tpu.dot_dimension_numbers<[1], [0], [0], [1], [0, 0, 1, 1], [], []>} : vector<16x128xf32>, vector<128x128xf32>, vector<16x128xf32> -> vector<16x128xf32>
    %7 = arith.addf %4, %6 : vector<16x128xf32>
    %c0_6 = arith.constant 0 : index
    %c0_7 = arith.constant 0 : index
    %8 = vector.load %arg9[%c0_6, %c0_7] : memref<16x128xf32, #tpu.memory_space<vmem>>, vector<16x128xf32>
    tpu.vector_store %arg9[%c0_6, %c0_7], %7 {strides = array<i32>} : memref<16x128xf32, #tpu.memory_space<vmem>>, vector<16x128xf32>,
    %c0_8 = arith.constant 0 : index
    %c0_9 = arith.constant 0 : index
    %9 = vector.load %arg10[%c0_8, %c0_9] : memref<16x128xf32, #tpu.memory_space<vmem>>, vector<16x128xf32>
    %c0_10 = arith.constant 0 : index
    %c0_11 = arith.constant 0 : index
    %10 = vector.load %arg6[%c0_10, %c0_11] : memref<128x128xf32, #tpu.memory_space<vmem>>, vector<128x128xf32>
    %cst_12 = arith.constant dense<0.000000e+00> : vector<16x128xf32>
    %11 = tpu.matmul %3, %10, %cst_12 {dimension_numbers = #tpu.dot_dimension_numbers<[1], [0], [0], [1], [0, 0, 1, 1], [], []>} : vector<16x128xf32>, vector<128x128xf32>, vector<16x128xf32> -> vector<16x128xf32>
    %12 = arith.addf %9, %11 : vector<16x128xf32>
    %c0_13 = arith.constant 0 : index
    %c0_14 = arith.constant 0 : index
    %13 = vector.load %arg10[%c0_13, %c0_14] : memref<16x128xf32, #tpu.memory_space<vmem>>, vector<16x128xf32>
    tpu.vector_store %arg10[%c0_13, %c0_14], %12 {strides = array<i32>} : memref<16x128xf32, #tpu.memory_space<vmem>>, vector<16x128xf32>,
    %c0_i32_15 = arith.constant 0 : i32
    %14 = arith.cmpi eq, %arg2, %c0_i32_15 : i32
    %15 = arith.extui %14 : i1 to i32
    %c0_i32_16 = arith.constant 0 : i32
    %16 = arith.cmpi ne, %15, %c0_i32_16 : i32
    scf.if %16 {
      %c0_17 = arith.constant 0 : index
      %c0_18 = arith.constant 0 : index
      %17 = vector.load %arg10[%c0_17, %c0_18] : memref<16x128xf32, #tpu.memory_space<vmem>>, vector<16x128xf32>
      %c0_19 = arith.constant 0 : index
      %c0_20 = arith.constant 0 : index
      %18 = vector.load %arg7[%c0_19, %c0_20] : memref<128x128xf32, #tpu.memory_space<vmem>>, vector<128x128xf32>
      %cst_21 = arith.constant dense<0.000000e+00> : vector<16x128xf32>
      %19 = tpu.matmul %17, %18, %cst_21 {dimension_numbers = #tpu.dot_dimension_numbers<[1], [0], [0], [1], [0, 0, 1, 1], [], []>} : vector<16x128xf32>, vector<128x128xf32>, vector<16x128xf32> -> vector<16x128xf32>
      %c0_22 = arith.constant 0 : index
      %c0_23 = arith.constant 0 : index
      %20 = vector.load %arg9[%c0_22, %c0_23] : memref<16x128xf32, #tpu.memory_space<vmem>>, vector<16x128xf32>
      %c0_24 = arith.constant 0 : index
      %c0_25 = arith.constant 0 : index
      %21 = vector.load %arg5[%c0_24, %c0_25] : memref<1x128xf32, #tpu.memory_space<vmem>>, vector<1x128xf32>
      %22 = vector.broadcast %21 : vector<1x128xf32> to vector<16x128xf32>
      %23 = arith.addf %20, %22 : vector<16x128xf32>
      %24 = arith.addf %23, %19 : vector<16x128xf32>
      %c0_26 = arith.constant 0 : index
      %c0_27 = arith.constant 0 : index
      %25 = vector.load %arg8[%c0_26, %c0_27] : memref<16x128xf32, #tpu.memory_space<vmem>>, vector<16x128xf32>
      tpu.vector_store %arg8[%c0_26, %c0_27], %24 {strides = array<i32>} : memref<16x128xf32, #tpu.memory_space<vmem>>, vector<16x128xf32>,
    } else {
    }
    return
  }
  func.func @transform_0(%arg0: i32, %arg1: i32, %arg2: i32) -> (i32, i32) {
    %c0_i32 = arith.constant 0 : i32
    return %arg0, %arg2 : i32, i32
  }
  func.func @transform_1(%arg0: i32, %arg1: i32, %arg2: i32) -> (i32, i32) {
    %c0_i32 = arith.constant 0 : i32
    return %arg2, %arg1 : i32, i32
  }
  func.func @transform_2(%arg0: i32, %arg1: i32, %arg2: i32) -> (i32, i32) {
    %c0_i32 = arith.constant 0 : i32
    %c0_i32_0 = arith.constant 0 : i32
    return %c0_i32, %arg1 : i32, i32
  }
  func.func @transform_3(%arg0: i32, %arg1: i32, %arg2: i32) -> (i32, i32) {
    %c0_i32 = arith.constant 0 : i32
    %c0_i32_0 = arith.constant 0 : i32
    return %arg2, %c0_i32 : i32, i32
  }
  func.func @transform_4(%arg0: i32, %arg1: i32, %arg2: i32) -> (i32, i32) {
    %c0_i32 = arith.constant 0 : i32
    %c0_i32_0 = arith.constant 0 : i32
    return %c0_i32, %arg1 : i32, i32
  }
  func.func @transform_5(%arg0: i32, %arg1: i32, %arg2: i32) -> (i32, i32) {
    %c0_i32 = arith.constant 0 : i32
    return %arg0, %arg1 : i32, i32
  }
}

</mosaic_0001>

<bundles_post_ra>
// kernel: tpu_custom_call.1
= control target key start
LH: loop header
LB: loop body
LE: loop exit
PB: predicated region body
PF: predicated region fallthrough
CT: control target
= control target key end

     0   :  { %10 = vsyncpa [#allocation5], 0  ;;  %s961_s0 = inlined_call_operand.hbm [shape: f32[16,128], index: 0, kind: input, shape index: {}]   ;;  %s962_s1 = inlined_call_operand.hbm [shape: f32[128,128], index: 1, kind: input, shape index: {}]   ;;  %s963_s2 = inlined_call_operand.hbm [shape: f32[1,128], index: 2, kind: input, shape index: {}]   ;;  %s964_s3 = inlined_call_operand.hbm [shape: f32[128,128], index: 3, kind: input, shape index: {}]   ;;  %s965_s4 = inlined_call_operand.hbm [shape: f32[128,128], index: 4, kind: input, shape index: {}]   ;;  %s966_s5 = inlined_call_operand.hbm [shape: f32[16,128], index: 5, kind: output, shape index: {}]  }
   0x1   :  { %11 = vsyncpa [#allocation8], 0 }
   0x2   :  { %12 = vsyncpa [#allocation11], 0 }
   0x3   :  { %13 = vsyncpa [#allocation6], 0  ;;  %s829_s18 = smov [#allocation7]   ;;  %s830_s20 = smov [#allocation10]  }
   0x4   :  { %s31_s19 = sshll.u32 %s829_s18, 4  ;;  %s53_s21 = sshll.u32 %s830_s20, 4  ;;  %s32_s19 = int_to_ptr.vmem [resolvable:$true] %s31_s19  ;;  %s867_s21 = int_to_ptr.vmem [resolvable:$true] %s53_s21 }
   0x5   :  { %s689_s24 = scalar_lea.hbm %s962_s1, 2048 }
   0x6   :  { %p690_p0 = scmp.ne.s32.totalorder %s962_s1, %s689_s24  ;;  %p693_p1 = scmp.lt.u32.totalorder %s689_s24, %s962_s1 }
   0x8   :  { %p695_p2 = pnand %p693_p1, %p690_p0 }
   0xa   :  { %698 = shalt.err (!%p695_p2)
}
   0xb   :  { %s699_s29 = scalar_lea.vmem %s32_s19, 2048  ;;  %p704_p4 = scmp.lt.s32.totalorder %s32_s19, %s32_s19 }
   0xc   :  { %p700_p3 = scmp.ne.s32.totalorder %s32_s19, %s699_s29  ;;  %p705_p5 = scmp.lt.s32.totalorder %s699_s29, %s699_s29 }
   0xe   :  { %p706_p6 = por %p705_p5, %p704_p4 }
  0x10   :  { %p707_p7 = pnand %p706_p6, %p700_p3 }
  0x12   :  { %710 = shalt.err (!%p707_p7)
}
  0x13   :  { %s831_s30 = smov 128   ;;  %s832_s6 = smov 8  }
  0x14   :  { %37 = dma.hbm_to_vmem [thread:$0]  %s962_s1, 2048, %s32_s19, [#allocation8], %s831_s30, %s831_s30, %s832_s6  }
  0x15   :  { %s711_s11 = scalar_lea.hbm %s964_s3, 2048 }
  0x16   :  { %p712_p8 = scmp.ne.s32.totalorder %s964_s3, %s711_s11  ;;  %p715_p9 = scmp.lt.u32.totalorder %s711_s11, %s964_s3 }
  0x18   :  { %p717_p10 = pnand %p715_p9, %p712_p8 }
  0x1a   :  { %720 = shalt.err (!%p717_p10)
}
  0x1b   :  { %s721_s16 = scalar_lea.vmem %s867_s21, 2048  ;;  %p726_p12 = scmp.lt.s32.totalorder %s867_s21, %s867_s21 }
  0x1c   :  { %p722_p11 = scmp.ne.s32.totalorder %s867_s21, %s721_s16  ;;  %p727_p13 = scmp.lt.s32.totalorder %s721_s16, %s721_s16 }
  0x1e   :  { %p728_p0 = por %p727_p13, %p726_p12 }
  0x20   :  { %p729_p1 = pnand %p728_p0, %p722_p11 }
  0x22   :  { %732 = shalt.err (!%p729_p1)
}
  0x23   :  { %59 = dma.hbm_to_vmem [thread:$0]  %s964_s3, 2048, %s867_s21, [#allocation11], %s831_s30, %s831_s30, %s832_s6  }
  0x24   :  { %s833_s18 = smov [#allocation4]   ;;  %s834_s20 = smov [#allocation9]  }
  0x25   :  { %s19_s19 = sshll.u32 %s833_s18, 4  ;;  %s44_s22 = sshll.u32 %s834_s20, 4  ;;  %s20_s19 = int_to_ptr.vmem [resolvable:$true] %s19_s19  ;;  %s45_s22 = int_to_ptr.vmem [resolvable:$true] %s44_s22 }
  0x26   :  { %s733_s25 = scalar_lea.hbm %s961_s0, 256 }
  0x27   :  { %p734_p2 = scmp.ne.s32.totalorder %s961_s0, %s733_s25  ;;  %p737_p3 = scmp.lt.u32.totalorder %s733_s25, %s961_s0 }
  0x29   :  { %p739_p4 = pnand %p737_p3, %p734_p2 }
  0x2b   :  { %742 = shalt.err (!%p739_p4)
}
  0x2c   :  { %s743_s3 = scalar_lea.vmem %s20_s19, 256  ;;  %p748_p6 = scmp.lt.s32.totalorder %s20_s19, %s20_s19 }
  0x2d   :  { %p744_p5 = scmp.ne.s32.totalorder %s20_s19, %s743_s3  ;;  %p749_p7 = scmp.lt.s32.totalorder %s743_s3, %s743_s3 }
  0x2f   :  { %p750_p8 = por %p749_p7, %p748_p6 }
  0x31   :  { %p751_p9 = pnand %p750_p8, %p744_p5 }
  0x33   :  { %754 = shalt.err (!%p751_p9)
}
  0x34   :  { %25 = dma.hbm_to_vmem [thread:$0]  %s961_s0, 256, %s20_s19, [#allocation5], %s831_s30, %s831_s30, %s832_s6  }
  0x35   :  { %s755_s10 = scalar_lea.hbm %s963_s2, 16 }
  0x36   :  { %p756_p10 = scmp.ne.s32.totalorder %s963_s2, %s755_s10  ;;  %p759_p11 = scmp.lt.u32.totalorder %s755_s10, %s963_s2 }
  0x38   :  { %p761_p12 = pnand %p759_p11, %p756_p10 }
  0x3a   :  { %764 = shalt.err (!%p761_p12)
}
  0x3b   :  { %s765_s15 = scalar_lea.vmem %s45_s22, 16  ;;  %s769_s16 = scalar_lea.vmem %s45_s22, 32 }
  0x3c   :  { %p766_p13 = scmp.ne.s32.totalorder %s45_s22, %s765_s15  ;;  %p770_p0 = scmp.lt.s32.totalorder %s45_s22, %s45_s22 }
  0x3d   :  { %p771_p1 = scmp.lt.s32.totalorder %s769_s16, %s765_s15 }
  0x3f   :  { %p772_p2 = por %p771_p1, %p770_p0 }
  0x41   :  { %p773_p3 = pnand %p772_p2, %p766_p13 }
  0x43   :  { %776 = shalt.err (!%p773_p3)
}
  0x44   :  { %47 = dma.hbm_to_vmem [thread:$0]  %s963_s2, 16, %s45_s22, [#allocation8]  }
  0x45   :  { %s835_s17 = smov [#allocation12]   ;;  %s777_s23 = scalar_lea.hbm %s965_s4, 2048 }
  0x46   :  { %s65_s18 = sshll.u32 %s835_s17, 4  ;;  %p778_p4 = scmp.ne.s32.totalorder %s965_s4, %s777_s23  ;;  %s66_s18 = int_to_ptr.vmem [resolvable:$true] %s65_s18 }
  0x47   :  { %p781_p5 = scmp.lt.u32.totalorder %s777_s23, %s965_s4 }
  0x49   :  { %p783_p6 = pnand %p781_p5, %p778_p4 }
  0x4b   :  { %786 = shalt.err (!%p783_p6)
}
  0x4c   :  { %s787_s28 = scalar_lea.vmem %s66_s18, 2048  ;;  %p792_p8 = scmp.lt.s32.totalorder %s66_s18, %s66_s18 }
  0x4d   :  { %p788_p7 = scmp.ne.s32.totalorder %s66_s18, %s787_s28  ;;  %p793_p9 = scmp.lt.s32.totalorder %s787_s28, %s787_s28 }
  0x4f   :  { %p794_p10 = por %p793_p9, %p792_p8 }
  0x51   :  { %p795_p11 = pnand %p794_p10, %p788_p7 }
  0x53   :  { %798 = shalt.err (!%p795_p11)
}
  0x54   :  { %71 = dma.hbm_to_vmem [thread:$0]  %s965_s4, 2048, %s66_s18, [#allocation11], %s831_s30, %s831_s30, %s832_s6  }
  0x55   :  { %821 = dma.done.wait [#allocation5], 256  }
  0x56   :  { %822 = vsyncadd [#allocation5], 4294967040 }
  0x57   :  { %823 = dma.done.wait [#allocation8], 2064  }
  0x58   :  { %824 = vsyncadd [#allocation8], 4294965232 }
  0x59   :  { %825 = dma.done.wait [#allocation11], 4096  }
  0x5a   :  { %826 = vsyncadd [#allocation11], 4294963200  ;;  %v196_v0 = vld [vmem:[#allocation10] sm:$0xff]  ;;  %v197_v1 = vld [vmem:[#allocation10 + $0x8] sm:$0xff]  ;;  %s836_s4 = smov [#allocation13]  }
  0x5b   :  { %v198_v2 = vld [vmem:[#allocation10 + $0x10] sm:$0xff]  ;;  %v613_v3 = vpack.c.bf16 %v197_v1, %v196_v0  ;;  %v199_v4 = vld [vmem:[#allocation10 + $0x18] sm:$0xff]  ;;  %v200_v6 = vld [vmem:[#allocation10 + $0x20] sm:$0xff]  ;;  %s407_s29 = sshll.u32 %s836_s4, 4  ;;  %s408_s29 = int_to_ptr.vmem [resolvable:$true] %s407_s29 }
  0x5c   :  { %v617_v5 = vpack.c.bf16 %v199_v4, %v198_v2  ;;  %v201_v7 = vld [vmem:[#allocation10 + $0x28] sm:$0xff]  ;;  %v202_v9 = vld [vmem:[#allocation10 + $0x30] sm:$0xff]  ;;  %v203_v10 = vld [vmem:[#allocation10 + $0x38] sm:$0xff]  ;;  %s799_s3 = scalar_lea.vmem %s408_s29, 256  ;;  %p804_p13 = scmp.lt.s32.totalorder %s408_s29, %s408_s29 }
  0x5d   :  { %614 = vmatprep.subr.bf16.mxu1 %v613_v3  ;;  %v621_v8 = vpack.c.bf16 %v201_v7, %v200_v6  ;;  %v95_v11 = vld [vmem:[#allocation4] sm:$0xff]  ;;  %v99_v12 = vld [vmem:[#allocation7] sm:$0xff]  ;;  %v100_v13 = vld [vmem:[#allocation7 + $0x8] sm:$0xff]  ;;  %v625_v20 = vpack.c.bf16 %v203_v10, %v202_v9  ;;  %p800_p12 = scmp.ne.s32.totalorder %s408_s29, %s799_s3  ;;  %p805_p0 = scmp.lt.s32.totalorder %s799_s3, %s799_s3 }
  0x5e   :  { %616 = vmatpush3.bf16.msra.mxu1 %v613_v3  ;;  %543 = vmatprep.mubr.f32.mxu1 %v95_v11  ;;  %v101_v14 = vld [vmem:[#allocation7 + $0x10] sm:$0xff]  ;;  %v581_v15 = vpack.c.bf16 %v100_v13, %v99_v12  ;;  %v102_v16 = vld [vmem:[#allocation7 + $0x18] sm:$0xff]  ;;  %v103_v18 = vld [vmem:[#allocation7 + $0x20] sm:$0xff] }
  0x5f   :  { %618 = vmatprep.subr.bf16.mxu1 %v617_v5  ;;  %508 = vmatprep.mubr.f32.mxu0 %v95_v11  ;;  %v585_v17 = vpack.c.bf16 %v102_v16, %v101_v14  ;;  %v104_v19 = vld [vmem:[#allocation7 + $0x28] sm:$0xff]  ;;  %v105_v24 = vld [vmem:[#allocation7 + $0x30] sm:$0xff]  ;;  %v106_v25 = vld [vmem:[#allocation7 + $0x38] sm:$0xff]  ;;  %p806_p1 = por %p805_p0, %p804_p13 }
  0x60   :  { %582 = vmatprep.subr.bf16.mxu0 %v581_v15  ;;  %v204_v21 = vld [vmem:[#allocation10 + $0x40] sm:$0xff]  ;;  %v205_v22 = vld [vmem:[#allocation10 + $0x48] sm:$0xff]  ;;  %v589_v23 = vpack.c.bf16 %v104_v19, %v103_v18  ;;  %v206_v27 = vld [vmem:[#allocation10 + $0x50] sm:$0xff]  ;;  %v593_v29 = vpack.c.bf16 %v106_v25, %v105_v24 }
  0x61   :  { %584 = vmatpush3.bf16.msra.mxu0 %v581_v15  ;;  %v629_v26 = vpack.c.bf16 %v205_v22, %v204_v21  ;;  %v207_v28 = vld [vmem:[#allocation10 + $0x58] sm:$0xff]  ;;  %v108_v31 = vld [vmem:[#allocation7 + $0x48] sm:$0xff]  ;;  %v109_v36 = vld [vmem:[#allocation7 + $0x50] sm:$0xff]  ;;  %p807_p2 = pnand %p806_p1, %p800_p12 }
  0x62   :  { %620 = vmatpush3.bf16.msra.mxu1 %v617_v5  ;;  %586 = vmatprep.subr.bf16.mxu0 %v585_v17  ;;  %v107_v30 = vld [vmem:[#allocation7 + $0x40] sm:$0xff]  ;;  %v633_v32 = vpack.c.bf16 %v207_v28, %v206_v27  ;;  %v209_v34 = vld [vmem:[#allocation10 + $0x68] sm:$0xff]  ;;  %v110_v37 = vld [vmem:[#allocation7 + $0x58] sm:$0xff] }
  0x63   :  { %622 = vmatprep.subr.bf16.mxu1 %v621_v8  ;;  %v208_v33 = vld [vmem:[#allocation10 + $0x60] sm:$0xff]  ;;  %v597_v35 = vpack.c.bf16 %v108_v31, %v107_v30  ;;  %v210_v39 = vld [vmem:[#allocation10 + $0x70] sm:$0xff]  ;;  %v211_v40 = vld [vmem:[#allocation10 + $0x78] sm:$0xff]  ;;  %v601_v41 = vpack.c.bf16 %v110_v37, %v109_v36 }
  0x64   :  { %v637_v38 = vpack.c.bf16 %v209_v34, %v208_v33  ;;  %v111_v42 = vld [vmem:[#allocation7 + $0x60] sm:$0xff]  ;;  %v112_v43 = vld [vmem:[#allocation7 + $0x68] sm:$0xff]  ;;  %v641_v44 = vpack.c.bf16 %v211_v40, %v210_v39  ;;  %v113_v46 = vld [vmem:[#allocation7 + $0x70] sm:$0xff] }
  0x65   :  { %588 = vmatpush3.bf16.msra.mxu0 %v585_v17  ;;  %v605_v45 = vpack.c.bf16 %v112_v43, %v111_v42  ;;  %v114_v47 = vld [vmem:[#allocation7 + $0x78] sm:$0xff]  ;;  %v296_v50 = vld [vmem:[#allocation12] sm:$0xff]  ;;  %v297_v51 = vld [vmem:[#allocation12 + $0x8] sm:$0xff] }
  0x66   :  { %624 = vmatpush3.bf16.msra.mxu1 %v621_v8  ;;  %590 = vmatprep.subr.bf16.mxu0 %v589_v23  ;;  %v609_v48 = vpack.c.bf16 %v114_v47, %v113_v46  ;;  %v96_v49 = vld [vmem:[#allocation4 + $0x8] sm:$0xff]  ;;  %v645_v52 = vpack.c.bf16 %v297_v51, %v296_v50  ;;  %v300_v56 = vld [vmem:[#allocation12 + $0x20] sm:$0xff]  ;;  %v301_v57 = vld [vmem:[#allocation12 + $0x28] sm:$0xff] }
  0x67   :  { %626 = vmatprep.subr.bf16.mxu1 %v625_v20  ;;  %v298_v53 = vld [vmem:[#allocation12 + $0x10] sm:$0xff]  ;;  %v299_v54 = vld [vmem:[#allocation12 + $0x18] sm:$0xff]  ;;  %v653_v58 = vpack.c.bf16 %v301_v57, %v300_v56  ;;  %v304_v62 = vld [vmem:[#allocation12 + $0x40] sm:$0xff] }
  0x68   :  { %v649_v55 = vpack.c.bf16 %v299_v54, %v298_v53  ;;  %v302_v59 = vld [vmem:[#allocation12 + $0x30] sm:$0xff]  ;;  %v303_v60 = vld [vmem:[#allocation12 + $0x38] sm:$0xff]  ;;  %v305_v63 = vld [vmem:[#allocation12 + $0x48] sm:$0xff] }
  0x69   :  { %592 = vmatpush3.bf16.msra.mxu0 %v589_v23  ;;  %v657_v61 = vpack.c.bf16 %v303_v60, %v302_v59  ;;  %v661_v0 = vpack.c.bf16 %v305_v63, %v304_v62  ;;  %v306_v1 = vld [vmem:[#allocation12 + $0x50] sm:$0xff]  ;;  %v307_v2 = vld [vmem:[#allocation12 + $0x58] sm:$0xff]  ;;  %v308_v4 = vld [vmem:[#allocation12 + $0x60] sm:$0xff] }
  0x6a   :  { %628 = vmatpush3.bf16.msra.mxu1 %v625_v20  ;;  %594 = vmatprep.subr.bf16.mxu0 %v593_v29  ;;  %v665_v3 = vpack.c.bf16 %v307_v2, %v306_v1  ;;  %v309_v5 = vld [vmem:[#allocation12 + $0x68] sm:$0xff]  ;;  %v310_v7 = vld [vmem:[#allocation12 + $0x70] sm:$0xff]  ;;  %v311_v8 = vld [vmem:[#allocation12 + $0x78] sm:$0xff] }
  0x6b   :  { %630 = vmatprep.subr.bf16.mxu1 %v629_v26  ;;  %v669_v6 = vpack.c.bf16 %v309_v5, %v308_v4  ;;  %v673_v9 = vpack.c.bf16 %v311_v8, %v310_v7  ;;  %v421_v12 = vld [vmem:[#allocation9] ss:$0 sm:$0xff] }
  0x6d   :  { %596 = vmatpush3.bf16.msra.mxu0 %v593_v29 }
  0x6e   :  { %632 = vmatpush3.bf16.msra.mxu1 %v629_v26  ;;  %598 = vmatprep.subr.bf16.mxu0 %v597_v35 }
  0x6f   :  { %634 = vmatprep.subr.bf16.mxu1 %v633_v32 }
  0x71   :  { %600 = vmatpush3.bf16.msra.mxu0 %v597_v35 }
  0x72   :  { %636 = vmatpush3.bf16.msra.mxu1 %v633_v32  ;;  %602 = vmatprep.subr.bf16.mxu0 %v601_v41 }
  0x73   :  { %638 = vmatprep.subr.bf16.mxu1 %v637_v38 }
  0x75   :  { %604 = vmatpush3.bf16.msra.mxu0 %v601_v41 }
  0x76   :  { %640 = vmatpush3.bf16.msra.mxu1 %v637_v38  ;;  %606 = vmatprep.subr.bf16.mxu0 %v605_v45 }
  0x77   :  { %642 = vmatprep.subr.bf16.mxu1 %v641_v44 }
  0x79   :  { %608 = vmatpush3.bf16.msra.mxu0 %v605_v45 }
  0x7a   :  { %644 = vmatpush3.bf16.msra.mxu1 %v641_v44  ;;  %610 = vmatprep.subr.bf16.mxu0 %v609_v48 }
  0x7d   :  { %544 = vmatmul.mubr.f32.vlgmr.msra.gmra.mrb[0].mxu1 %v96_v49  ;;  %612 = vmatpush3.bf16.msra.mxu0 %v609_v48 }
  0x7e   :  { %646 = vmatprep.subr.bf16.mxu0 %v645_v52 }
  0x80   :  { %509 = vmatmul.mubr.f32.vlgmr.msra.gmra.mrb[0].mxu0 %v96_v49 }
  0x81   :  { %648 = vmatpush3.bf16.msra.mxu0 %v645_v52 }
  0x82   :  { %650 = vmatprep.subr.bf16.mxu0 %v649_v55 }
  0x85   :  { %652 = vmatpush3.bf16.msra.mxu0 %v649_v55 }
  0x86   :  { %654 = vmatprep.subr.bf16.mxu0 %v653_v58 }
  0x89   :  { %656 = vmatpush3.bf16.msra.mxu0 %v653_v58 }
  0x8a   :  { %658 = vmatprep.subr.bf16.mxu0 %v657_v61 }
  0x8d   :  { %660 = vmatpush3.bf16.msra.mxu0 %v657_v61 }
  0x8e   :  { %662 = vmatprep.subr.bf16.mxu0 %v661_v0 }
  0x91   :  { %664 = vmatpush3.bf16.msra.mxu0 %v661_v0 }
  0x92   :  { %666 = vmatprep.subr.bf16.mxu0 %v665_v3 }
  0x95   :  { %668 = vmatpush3.bf16.msra.mxu0 %v665_v3 }
  0x96   :  { %670 = vmatprep.subr.bf16.mxu0 %v669_v6 }
  0x99   :  { %672 = vmatpush3.bf16.msra.mxu0 %v669_v6 }
  0x9a   :  { %674 = vmatprep.subr.bf16.mxu0 %v673_v9 }
  0x9d   :  { %676 = vmatpush3.bf16.msra.mxu0 %v673_v9 }
 0x150   :  { %v545_v10 = vpop.f32.mrb[0].mxu1 }
 0x151   :  { %v278_v11 = vpop.f32.mrb[1].mxu1 }
 0x152   :  { %578 = vmatprep.mubr.f32.mxu0 %v278_v11 }
 0x153   :  { %579 = vmatmul.mubr.f32.vlgmr.msra.gmra.mrb[0].mxu0 %v545_v10 }
 0x226   :  { %v580_v13 = vpop.f32.mrb[0].mxu0 }
 0x227   :  { %v677_v14 = vadd.f32 %v580_v13, %v421_v12  ;;  %v378_v15 = vpop.f32.mrb[1].mxu0 }
 0x228   :  { %v678_v16 = vadd.f32 %v421_v12, %v378_v15 }
 0x229   :  { %401 = vst [vmem:[#allocation13 + $0x8] sm:$0xff] %v677_v14 }
 0x22a   :  { %400 = vst [vmem:[#allocation13] sm:$0xff] %v678_v16 }
 0x22b   :  { %810 = shalt.err (!%p807_p2)
}
 0x22c   :  { %s811_s8 = scalar_lea.hbm %s966_s5, 256 }
 0x22d   :  { %p812_p3 = scmp.ne.s32.totalorder %s966_s5, %s811_s8  ;;  %p815_p4 = scmp.lt.u32.totalorder %s811_s8, %s966_s5 }
 0x22f   :  { %p817_p5 = pnand %p815_p4, %p812_p3 }
 0x231   :  { %820 = shalt.err (!%p817_p5)
}
 0x232   :  { %413 = dma.vmem_to_hbm [thread:$0]  %s408_s29, 256, %s966_s5, [#allocation6], %s831_s30, %s831_s30, %s832_s6  }
 0x233   :  { %827 = dma.done.wait [#allocation6], 256  }
 0x234   :  { %828 = vsyncadd [#allocation6], 4294967040 }
 0x235   :  { %417 = vsyncpa [#allocation5], 1 }
 0x236   :  { %418 = vsyncpa [#allocation8], 1 }
 0x237   :  { %419 = vsyncpa [#allocation11], 1 }
 0x238   :  { %420 = vsyncpa [#allocation6], 1 }

</bundles_post_ra>
